<compile_context>
chip_gen: v5e
topology: v5e:2x2
jax: 0.10.0
libtpu: 0.0.40
codegen_flags: <defaults>
</compile_context>

<pallas_src>
import jax
import jax.numpy as jnp
from jax.experimental import pallas as pl
from jax.experimental.pallas import tpu as pltpu


def _band_attention_kernel(x_ref, w1s_ref, w2t_ref, rep_ref, o_ref):
    x = x_ref[...]                                                      # (TB, C*F)
    # Channel mean folded into the first matmul (w1s = stack_C(W1^T) / C).
    h = jnp.dot(x, w1s_ref[...], preferred_element_type=jnp.float32)   # (TB, F)
    h = jnp.maximum(h, 0.0)
    a = jnp.dot(h, w2t_ref[...], preferred_element_type=jnp.float32)   # (TB, F)
    # sigmoid(a) = 0.5*(tanh(a/2)+1): one EUP push, on the narrow (TB, F) tile.
    attn = 0.5 * (jnp.tanh(0.5 * a) + 1.0)                              # (TB, F)
    # Broadcast across the C channel copies with a 0/1 replication matmul
    # (MXU has huge slack) -> lane-dense (TB, C*F) scale factor.
    attn_wide = jnp.dot(attn, rep_ref[...], preferred_element_type=jnp.float32)
    o_ref[...] = x * attn_wide.astype(o_ref.dtype)


def _vmem_capacity_bytes():
    try:
        return int(pltpu.get_tpu_info().vmem_capacity_bytes)
    except Exception:
        return 64 << 20            # conservative (v7x-sized) fallback


def _pick_block_b(B, CF, itemsize, vmem_cap, sub):
    if B <= 8:
        return B                   # single full-extent tile (tiny / non-x8 B)
    # VMEM budget: double-buffered in+out tiles plus generous f32 temps.
    per_row = 4 * CF * itemsize + 3 * CF * 4
    cap_rows = max(1024, (vmem_cap * 2 // 5) // per_row)
    cap_rows = min(cap_rows, 32768)
    cap_rows = max(sub, (cap_rows // sub) * sub)
    # Prefer >= 2 grid steps: v7x has 2 TensorCores sharing the "parallel"
    # axis, and >1 step lets the input/output DMA pipeline overlap compute.
    half = -(-B // 2)              # ceil(B / 2)
    half = -(-half // sub) * sub   # round up to sublane multiple
    blk = min(cap_rows, half)
    if blk >= B:
        return B
    return blk


def band_attention(x, w1, w2, *, block_b=None):
    """x: (B, C, F); w1, w2: (F, F) torch-style Linear weights (out, in)."""
    B, C, F = x.shape
    CF = C * F
    itemsize = jnp.dtype(x.dtype).itemsize
    sub = 8 if itemsize >= 4 else 16        # sublane multiple for row tiles
    vmem_cap = _vmem_capacity_bytes()

    if block_b is None:
        block_b = _pick_block_b(B, CF, itemsize, vmem_cap, sub)
    else:
        # Guard user-provided tile sizes: must be full-extent or a sublane
        # multiple, otherwise the BlockSpec would be rejected.
        block_b = B if block_b >= B else max(sub, (block_b // sub) * sub)
    grid_b = pl.cdiv(B, block_b)

    # Wrapper-side layout plumbing (tiny constant transforms).
    x_flat = x.reshape(B, CF)                                       # lane-dense
    w1s = jnp.tile(jnp.transpose(w1) / float(C), (C, 1)).astype(x.dtype)  # (C*F, F)
    w2t = jnp.transpose(w2).astype(jnp.float32)                     # (F, F)
    rep = jnp.tile(jnp.eye(F, dtype=jnp.float32), (1, C))           # (F, C*F)

    # Raise the scoped VMEM limit to cover the chosen tile (defaults are only
    # 16 MiB on v5e / 32 MiB on v6e & v7x), staying well below physical VMEM.
    est = 4 * block_b * CF * itemsize + 3 * block_b * CF * 4 + (2 << 20)
    vmem_limit = int(min(max(est, 16 << 20), vmem_cap * 3 // 4))

    out_flat = pl.pallas_call(
        _band_attention_kernel,
        out_shape=jax.ShapeDtypeStruct((B, CF), x.dtype),
        grid_spec=pltpu.PrefetchScalarGridSpec(
            num_scalar_prefetch=0,
            grid=(grid_b,),
            in_specs=[
                pl.BlockSpec((block_b, CF), lambda i: (i, 0)),
                # Constant index_maps -> weights resident across grid steps.
                pl.BlockSpec((CF, F), lambda i: (0, 0)),
                pl.BlockSpec((F, F), lambda i: (0, 0)),
                pl.BlockSpec((F, CF), lambda i: (0, 0)),
            ],
            out_specs=pl.BlockSpec((block_b, CF), lambda i: (i, 0)),
        ),
        compiler_params=pltpu.CompilerParams(
            dimension_semantics=("parallel",),
            vmem_limit_bytes=vmem_limit),
        # TODO(synk): add input_output_aliases={0: 0} (in-place scale of
        # x_flat) when the caller no longer needs x after this op.
    )(x_flat, w1s, w2t, rep)

    return out_flat.reshape(B, C, F)


def band_attention_ref(x, w1, w2):
    avg = jnp.mean(x, axis=1)
    h = jnp.maximum(avg @ w1.T, 0.0)
    attn = jax.nn.sigmoid(h @ w2.T)
    return x * attn[:, None, :]


if __name__ == "__main__":
    key = jax.random.PRNGKey(0)
    kx, k1, k2, kx2 = jax.random.split(key, 4)

    B, C, F = 2, 4, 32  # num_bands = 32

    x = jax.random.normal(kx, (B, C, F), dtype=jnp.float32)
    # torch-like init for Linear(F, F, bias=False): uniform(-1/sqrt(F), 1/sqrt(F)),
    # weight shape (out_features, in_features)
    bound = 1.0 / jnp.sqrt(jnp.float32(F))
    w1 = jax.random.uniform(k1, (F, F), jnp.float32, -bound, bound)
    w2 = jax.random.uniform(k2, (F, F), jnp.float32, -bound, bound)

    out = jax.block_until_ready(band_attention(x, w1, w2))
    ref = band_attention_ref(x, w1, w2)
    assert out.shape == (B, C, F)
    assert jnp.allclose(out, ref, atol=1e-5, rtol=1e-5), float(
        jnp.max(jnp.abs(out - ref)))

    # Exercise the multi-tile (grid_b >= 2) + partial-last-tile path.
    B2 = 40
    x2 = jax.random.normal(kx2, (B2, C, F), dtype=jnp.float32)
    out2 = jax.block_until_ready(band_attention(x2, w1, w2))
    ref2 = band_attention_ref(x2, w1, w2)
    assert out2.shape == (B2, C, F)
    assert jnp.allclose(out2, ref2, atol=1e-5, rtol=1e-5), float(
        jnp.max(jnp.abs(out2 - ref2)))

    print("KERNEL_OK")
</pallas_src>

<mosaic_0001>
module attributes {stable_mosaic.version = 11 : i64} {
  func.func @_band_attention_kernel(%arg0: i32, %arg1: memref<2x128xf32, #tpu.memory_space<vmem>>, %arg2: memref<128x32xf32, #tpu.memory_space<vmem>>, %arg3: memref<32x32xf32, #tpu.memory_space<vmem>>, %arg4: memref<32x128xf32, #tpu.memory_space<vmem>>, %arg5: memref<2x128xf32, #tpu.memory_space<vmem>>) attributes {dimension_semantics = [#tpu.dimension_semantics<parallel>], iteration_bounds = array<i64: 1>, scalar_prefetch = 0 : i64, scratch_operands = 0 : i64, tpu.core_type = #tpu.core_type<tc>, window_params = [{transform_indices = @transform_0, window_bounds = array<i64: 2, 128>}, {pipeline_mode = #tpu.pipeline_mode<synchronous>, transform_indices = @transform_1, window_bounds = array<i64: 128, 32>}, {pipeline_mode = #tpu.pipeline_mode<synchronous>, transform_indices = @transform_2, window_bounds = array<i64: 32, 32>}, {pipeline_mode = #tpu.pipeline_mode<synchronous>, transform_indices = @transform_3, window_bounds = array<i64: 32, 128>}, {transform_indices = @transform_4, window_bounds = array<i64: 2, 128>}]} {
    %c0 = arith.constant 0 : index
    %c0_0 = arith.constant 0 : index
    %0 = vector.load %arg1[%c0, %c0_0] : memref<2x128xf32, #tpu.memory_space<vmem>>, vector<2x128xf32>
    %c0_1 = arith.constant 0 : index
    %c0_2 = arith.constant 0 : index
    %1 = vector.load %arg2[%c0_1, %c0_2] : memref<128x32xf32, #tpu.memory_space<vmem>>, vector<128x32xf32>
    %cst = arith.constant dense<0.000000e+00> : vector<2x32xf32>
    %2 = tpu.matmul %0, %1, %cst {dimension_numbers = #tpu.dot_dimension_numbers<[1], [0], [0], [1], [0, 0, 1, 1], [], []>} : vector<2x128xf32>, vector<128x32xf32>, vector<2x32xf32> -> vector<2x32xf32>
    %cst_3 = arith.constant 0.000000e+00 : f32
    %3 = vector.broadcast %cst_3 : f32 to vector<2x32xf32>
    %4 = arith.maximumf %2, %3 : vector<2x32xf32>
    %c0_4 = arith.constant 0 : index
    %c0_5 = arith.constant 0 : index
    %5 = vector.load %arg3[%c0_4, %c0_5] : memref<32x32xf32, #tpu.memory_space<vmem>>, vector<32x32xf32>
    %cst_6 = arith.constant dense<0.000000e+00> : vector<2x32xf32>
    %6 = tpu.matmul %4, %5, %cst_6 {dimension_numbers = #tpu.dot_dimension_numbers<[1], [0], [0], [1], [0, 0, 1, 1], [], []>} : vector<2x32xf32>, vector<32x32xf32>, vector<2x32xf32> -> vector<2x32xf32>
    %cst_7 = arith.constant 5.000000e-01 : f32
    %7 = vector.broadcast %cst_7 : f32 to vector<2x32xf32>
    %8 = arith.mulf %7, %6 : vector<2x32xf32>
    %9 = math.tanh %8 : vector<2x32xf32>
    %cst_8 = arith.constant 1.000000e+00 : f32
    %10 = vector.broadcast %cst_8 : f32 to vector<2x32xf32>
    %11 = arith.addf %9, %10 : vector<2x32xf32>
    %cst_9 = arith.constant 5.000000e-01 : f32
    %12 = vector.broadcast %cst_9 : f32 to vector<2x32xf32>
    %13 = arith.mulf %12, %11 : vector<2x32xf32>
    %c0_10 = arith.constant 0 : index
    %c0_11 = arith.constant 0 : index
    %14 = vector.load %arg4[%c0_10, %c0_11] : memref<32x128xf32, #tpu.memory_space<vmem>>, vector<32x128xf32>
    %cst_12 = arith.constant dense<0.000000e+00> : vector<2x128xf32>
    %15 = tpu.matmul %13, %14, %cst_12 {dimension_numbers = #tpu.dot_dimension_numbers<[1], [0], [0], [1], [0, 0, 1, 1], [], []>} : vector<2x32xf32>, vector<32x128xf32>, vector<2x128xf32> -> vector<2x128xf32>
    %16 = arith.mulf %0, %15 : vector<2x128xf32>
    %c0_13 = arith.constant 0 : index
    %c0_14 = arith.constant 0 : index
    %17 = vector.load %arg5[%c0_13, %c0_14] : memref<2x128xf32, #tpu.memory_space<vmem>>, vector<2x128xf32>
    tpu.vector_store %arg5[%c0_13, %c0_14], %16 {strides = array<i32>} : memref<2x128xf32, #tpu.memory_space<vmem>>, vector<2x128xf32>,
    return
  }
  func.func @transform_0(%arg0: i32) -> (i32, i32) {
    %c0_i32 = arith.constant 0 : i32
    %c0_i32_0 = arith.constant 0 : i32
    return %arg0, %c0_i32 : i32, i32
  }
  func.func @transform_1(%arg0: i32) -> (i32, i32) {
    %c0_i32 = arith.constant 0 : i32
    %c0_i32_0 = arith.constant 0 : i32
    %c0_i32_1 = arith.constant 0 : i32
    return %c0_i32, %c0_i32_0 : i32, i32
  }
  func.func @transform_2(%arg0: i32) -> (i32, i32) {
    %c0_i32 = arith.constant 0 : i32
    %c0_i32_0 = arith.constant 0 : i32
    %c0_i32_1 = arith.constant 0 : i32
    return %c0_i32, %c0_i32_0 : i32, i32
  }
  func.func @transform_3(%arg0: i32) -> (i32, i32) {
    %c0_i32 = arith.constant 0 : i32
    %c0_i32_0 = arith.constant 0 : i32
    %c0_i32_1 = arith.constant 0 : i32
    return %c0_i32, %c0_i32_0 : i32, i32
  }
  func.func @transform_4(%arg0: i32) -> (i32, i32) {
    %c0_i32 = arith.constant 0 : i32
    %c0_i32_0 = arith.constant 0 : i32
    return %arg0, %c0_i32 : i32, i32
  }
}

</mosaic_0001>

<bundles_post_ra>
// kernel: tpu_custom_call.1
= control target key start
LH: loop header
LB: loop body
LE: loop exit
PB: predicated region body
PF: predicated region fallthrough
CT: control target
= control target key end

     0   :  { %s270_s0 = inlined_call_operand.vmem [shape: f32[2,128], index: 0, kind: input, shape index: {}]   ;;  %s271_s1 = inlined_call_operand.vmem [shape: f32[128,32], index: 1, kind: input, shape index: {}]   ;;  %s272_s2 = inlined_call_operand.vmem [shape: f32[32,32], index: 2, kind: input, shape index: {}]   ;;  %s273_s3 = inlined_call_operand.vmem [shape: f32[32,128], index: 3, kind: input, shape index: {}]   ;;  %s274_s4 = inlined_call_operand.hbm [shape: f32[2,128], index: 4, kind: output, shape index: {}]  }
   0x1   :  { %v34_v0 = vld [vmem:[%s271_s1 + $0x78] sm:$0xff]  ;;  %v33_v1 = vld [vmem:[%s271_s1 + $0x70] sm:$0xff]  ;;  %v32_v2 = vld [vmem:[%s271_s1 + $0x68] sm:$0xff] }
   0x2   :  { %35 = vmatpush.msra.mxu0 %v34_v0  ;;  %v31_v3 = vld [vmem:[%s271_s1 + $0x60] sm:$0xff]  ;;  %v59_v4 = vld [vmem:[%s272_s2 + $0x18] sm:$0xff]  ;;  %v58_v6 = vld [vmem:[%s272_s2 + $0x10] sm:$0xff] }
   0x3   :  { %v30_v5 = vld [vmem:[%s271_s1 + $0x58] sm:$0xff]  ;;  %76 = vmatpush.msra.mxu1 %v59_v4 }
   0x4   :  { %36 = vmatpush.msra.mxu0 %v33_v1 }
   0x6   :  { %37 = vmatpush.msra.mxu0 %v32_v2 }
   0x7   :  { %9 = vsyncpa [#allocation3], 0  ;;  %v29_v7 = vld [vmem:[%s271_s1 + $0x50] sm:$0xff]  ;;  %77 = vmatpush.msra.mxu1 %v58_v6  ;;  %v28_v8 = vld [vmem:[%s271_s1 + $0x48] sm:$0xff]  ;;  %vm60_vm0 = vcmask 261120   ;;  %s164_s10 = smov [#allocation2]  }
   0x8   :  { %38 = vmatpush.msra.mxu0 %v31_v3  ;;  %v27_v9 = vld [vmem:[%s271_s1 + $0x40] sm:$0xff]  ;;  %v26_v10 = vld [vmem:[%s271_s1 + $0x38] sm:$0xff]  ;;  %v25_v11 = vld [vmem:[%s271_s1 + $0x30] sm:$0xff]  ;;  %s122_s11 = sshll.u32 %s164_s10, 4  ;;  %s124_s14 = sshll.u32 %s274_s4, 4  ;;  %s123_s11 = int_to_ptr.vmem [resolvable:$true] %s122_s11  ;;  %s125_s14 = int_to_ptr.hbm [resolvable:$true] %s124_s14 }
   0x9   :  { %v24_v12 = vld [vmem:[%s271_s1 + $0x28] sm:$0xff]  ;;  %v23_v13 = vld [vmem:[%s271_s1 + $0x20] sm:$0xff]  ;;  %v22_v14 = vld [vmem:[%s271_s1 + $0x18] sm:$0xff] }
   0xa   :  { %39 = vmatpush.msra.mxu0 %v30_v5  ;;  %v21_v15 = vld [vmem:[%s271_s1 + $0x10] sm:$0xff]  ;;  %v20_v16 = vld [vmem:[%s271_s1 + $0x8] sm:$0xff]  ;;  %v19_v17 = vld [vmem:[%s271_s1] sm:$0xff] }
   0xb   :  { %v18_v18 = vld [vmem:[%s270_s0] sm:$0x3]  ;;  %v57_v19 = vld [vmem:[%s272_s2 + $0x8] sm:$0xff]  ;;  %v91_v23 = vld [vmem:[%s273_s3 + $0x18] sm:$0xff] }
   0xc   :  { %40 = vmatpush.msra.mxu0 %v29_v7  ;;  %78 = vmatpush.msra.mxu1 %v57_v19  ;;  %v56_v20 = vld [vmem:[%s272_s2] sm:$0xff]  ;;  %v90_v24 = vld [vmem:[%s273_s3 + $0x10] sm:$0xff]  ;;  %v89_v25 = vld [vmem:[%s273_s3 + $0x8] sm:$0xff] }
   0xd   :  { %107 = vmatpush.msra.mxu2 %v91_v23  ;;  %v88_v26 = vld [vmem:[%s273_s3] sm:$0xff] }
   0xe   :  { %41 = vmatpush.msra.mxu0 %v28_v8  ;;  %79 = vmatpush.msra.mxu1 %v56_v20 }
   0xf   :  { %108 = vmatpush.msra.mxu2 %v90_v24 }
  0x10   :  { %42 = vmatpush.msra.mxu0 %v27_v9 }
  0x11   :  { %109 = vmatpush.msra.mxu2 %v89_v25 }
  0x12   :  { %43 = vmatpush.msra.mxu0 %v26_v10 }
  0x13   :  { %110 = vmatpush.msra.mxu2 %v88_v26 }
  0x14   :  { %44 = vmatpush.msra.mxu0 %v25_v11 }
  0x16   :  { %45 = vmatpush.msra.mxu0 %v24_v12 }
  0x18   :  { %46 = vmatpush.msra.mxu0 %v23_v13 }
  0x1a   :  { %47 = vmatpush.msra.mxu0 %v22_v14 }
  0x1c   :  { %48 = vmatpush.msra.mxu0 %v21_v15 }
  0x1e   :  { %49 = vmatpush.msra.mxu0 %v20_v16 }
  0x20   :  { %50 = vmatpush.msra.mxu0 %v19_v17 }
  0x21   :  { %51 = vmatmul.f32.vlgmr.msra.gmra.mxu0 %v18_v18 }
  0x9e   :  { %v52_v21 = vpop.f32.mrf.mxu0 }
  0x9f   :  { %v55_v22 = vmax.f32 %v52_v21, 0.0 }
  0xa1   :  { %133 = vmatmul.msk.f32.vlgmr.msra.gmra.mxu1 %vm60_vm0, %v55_v22 }
 0x11e   :  { %v81_v27 = vpop.f32.mrf.mxu1 }
 0x11f   :  { %v84_v28 = vmul.f32 0.5, %v81_v27 }
 0x121   :  { %136 = vtanh.f32 %v84_v28 }
 0x127   :  { %v137_v29 = vpop.eup %136 }
 0x128   :  { %v86_v30 = vadd.f32 1.0, %v137_v29 }
 0x12a   :  { %v87_v31 = vmul.f32 0.5, %v86_v30 }
 0x12c   :  { %134 = vmatmul.msk.f32.vlgmr.msra.gmra.mxu2 %vm60_vm0, %v87_v31 }
 0x1af   :  { %v112_v32 = vpop.f32.mrf.mxu2 }
 0x1b0   :  { %v115_v33 = vmul.f32 %v112_v32, %v18_v18 }
 0x1b2   :  { %116 = vst [vmem:[#allocation2] sm:$0x3] %v115_v33 }
 0x1b3   :  { %127 = dma.vmem_to_hbm [thread:$0]  %s123_s11, 32, %s125_s14, [#allocation3]  }
 0x1b4   :  { %162 = dma.done.wait [#allocation3], 32  }
 0x1b5   :  { %163 = vsyncadd [#allocation3], 4294967264 }
 0x1b6   :  { %132 = vsyncpa [#allocation3], 1 }

</bundles_post_ra>
